<compile_context>
chip_gen: v7x
topology: tpu7x:2x2x1
jax: 0.10.0
libtpu: 0.0.40
codegen_flags: <defaults>
</compile_context>

<pallas_src>
import jax
import jax.numpy as jnp
from jax.experimental import pallas as pl
from jax.experimental.pallas import tpu as pltpu

LN_EPS = 1e-5
_SQRT_2_OVER_PI = 0.7978845608028654
_GELU_C = 0.044715


def _gelu(x):
    # tanh-approximate GELU (lowers to EUP tanh on TPU); math stays f32.
    return 0.5 * x * (1.0 + jnp.tanh(_SQRT_2_OVER_PI * (x + _GELU_C * x * x * x)))


def _layernorm(x, gamma, beta):
    # x: (rows, D) f32; gamma/beta: (1, D) f32. Biased variance (torch semantics).
    mean = jnp.mean(x, axis=-1, keepdims=True)
    cen = x - mean
    var = jnp.mean(cen * cen, axis=-1, keepdims=True)
    return cen * jax.lax.rsqrt(var + LN_EPS) * gamma + beta


def linear_layer_kernel(x_ref, ln1_g_ref, ln1_b_ref, wu_ref, bu_ref,
                        sgu_g_ref, sgu_b_ref, wblk_ref, bsp_ref,
                        wv_ref, bv_ref, ln2_g_ref, ln2_b_ref, o_ref):
    bt, T, H = x_ref.shape
    F = wu_ref.shape[1] // 2
    O = wv_ref.shape[1]
    rows = bt * T

    # ---- LayerNorm1 (f32 stats); the result doubles as the residual branch ----
    x = x_ref[...].reshape(rows, H).astype(jnp.float32)
    xn = _layernorm(x, ln1_g_ref[...].astype(jnp.float32),
                    ln1_b_ref[...].astype(jnp.float32))             # (rows, H)

    # ---- U_map: one fused (rows,H)@(H,2F) MXU matmul (bf16 feeds, f32 acc) + GELU ----
    h = jnp.dot(xn.astype(wu_ref.dtype), wu_ref[...],
                preferred_element_type=jnp.float32)
    h = _gelu(h + bu_ref[...].astype(jnp.float32))                  # (rows, 2F)
    u = h[:, :F]          # F is a multiple of 128 in the demo -> lane-tile-aligned slice
    v = h[:, F:]

    # ---- SpatialGatingUnit: LayerNorm(v), block-diag seq-mix matmul, gating ----
    v_n = _layernorm(v, sgu_g_ref[...].astype(jnp.float32),
                     sgu_b_ref[...].astype(jnp.float32))            # (rows, F)
    v_mix = jnp.dot(wblk_ref[...], v_n.astype(wblk_ref.dtype),
                    preferred_element_type=jnp.float32)             # kron(I_bt, W_sp) @ v_n
    v_mix = v_mix + bsp_ref[...].astype(jnp.float32)                # (rows, 1) bias broadcast
    g = u * v_mix                                                   # (rows, F)

    # ---- V_map ----
    y = jnp.dot(g.astype(wv_ref.dtype), wv_ref[...],
                preferred_element_type=jnp.float32)
    y = y + bv_ref[...].astype(jnp.float32)                         # (rows, O)

    # ---- LayerNorm2 + GELU + residual average ----
    y = _gelu(_layernorm(y, ln2_g_ref[...].astype(jnp.float32),
                         ln2_b_ref[...].astype(jnp.float32)))
    out = 0.5 * (xn + y)                                            # O == H
    o_ref[...] = out.reshape(bt, T, O).astype(o_ref.dtype)


def _vmem_capacity_bytes():
    """Physical per-core VMEM via pltpu.get_tpu_info(), with a conservative fallback."""
    try:
        info = pltpu.get_tpu_info()
        for attr in ("vmem_capacity_bytes", "vmem_size_bytes", "vmem_bytes"):
            val = getattr(info, attr, None)
            if val:
                return int(val)
    except Exception:
        pass
    return 64 * 1024 * 1024   # v7x-sized conservative fallback


def _pick_batch_tile(B, T, H, F, O, act_itemsize, budget_bytes, max_rows=1024):
    """Largest batch tile whose VMEM footprint fits, preferring a >=2-step grid."""
    def footprint(bt):
        rows = bt * T
        io = 2 * rows * (H + O) * act_itemsize           # double-buffered x / out blocks
        mix_w = rows * rows * 2                          # bf16 block-diag seq-mix weight
        tmp = rows * (H + 5 * F + 2 * O) * 4             # live f32 intermediates
        return io + mix_w + tmp
    divisors = [d for d in range(1, B + 1) if B % d == 0]
    fitting = [d for d in divisors
               if d * T <= max_rows and footprint(d) <= budget_bytes] or [1]
    # Prefer >=2 grid steps so the "parallel" axis can shard across TensorCores (v7x).
    preferred = [d for d in fitting if B // d >= 2] or fitting
    return max(preferred)


def linear_layer(x, ln1_g, ln1_b, wu, bu, sgu_g, sgu_b, w_sp, b_sp,
                 wv, bv, ln2_g, ln2_b, *, batch_tile=None, mxu_dtype=jnp.bfloat16):
    """Fused LinearLayer forward.

    x: (B, T, H).  wu/bu: U_map in torch Linear layout (2F, H)/(2F,).
    wv/bv: V_map (O, F)/(O,).  w_sp/b_sp: Conv1d(T,T,k=1) weight (kernel dim squeezed)
    (T, T)/(T,).  ln*_g/b, sgu_g/b: LayerNorm affine params.
    mxu_dtype: dtype fed to the MXU (f32 accumulation); None keeps the param dtype.
    """
    B, T, H = x.shape
    two_f = wu.shape[0]
    F = two_f // 2
    O = wv.shape[0]
    assert 2 * F == two_f
    assert O == H, "residual (skip + x)/2 requires out_dim == hidden_dim"

    w_dtype = mxu_dtype if mxu_dtype is not None else wu.dtype

    vmem_cap = _vmem_capacity_bytes()
    vmem_ceiling = max(int(vmem_cap * 0.8), 16 * 1024 * 1024)   # headroom for compiler scratch

    fixed_param_bytes = ((H * two_f + F * O) * jnp.dtype(w_dtype).itemsize
                         + (2 * H + two_f + 2 * F + 2 * O) * 4)

    if batch_tile is not None:
        bt = batch_tile
    else:
        budget = vmem_ceiling - fixed_param_bytes - 4 * 1024 * 1024
        bt = _pick_batch_tile(B, T, H, F, O, x.dtype.itemsize, max(budget, 1 << 20))
    assert B % bt == 0
    rows = bt * T

    # Wrapper-side layout plumbing (free): transpose torch Linear weights to row-major
    # matmul layout; cast MXU-fed weights to bf16 (f32 matmuls run multi-pass on the MXU);
    # biases / LayerNorm affine stay f32 so all VPU math stays f32 (important for v5e).
    wu_t = wu.T.astype(w_dtype)                                   # (H, 2F)
    wv_t = wv.T.astype(w_dtype)                                   # (F, O)
    bu2 = bu.reshape(1, two_f).astype(jnp.float32)
    bv2 = bv.reshape(1, O).astype(jnp.float32)
    ln1_g2, ln1_b2 = ln1_g.reshape(1, H), ln1_b.reshape(1, H)
    sgu_g2, sgu_b2 = sgu_g.reshape(1, F), sgu_b.reshape(1, F)
    ln2_g2, ln2_b2 = ln2_g.reshape(1, O), ln2_b.reshape(1, O)

    # Conv1d(k=1) seq mixing as a single block-diagonal matmul over the folded rows:
    # one full-K MXU op per grid step instead of bt tiny K=T matmuls + a concatenate.
    if bt == 1:
        w_blk = w_sp.astype(w_dtype)
    else:
        w_blk = jnp.kron(jnp.eye(bt, dtype=w_sp.dtype), w_sp).astype(w_dtype)
    b_sp_t = jnp.tile(b_sp.reshape(T, 1), (bt, 1)).astype(jnp.float32)    # (rows, 1)

    params = (ln1_g2, ln1_b2, wu_t, bu2, sgu_g2, sgu_b2,
              w_blk, b_sp_t, wv_t, bv2, ln2_g2, ln2_b2)

    # Scoped-VMEM limit: double-buffered x/out blocks + single-buffered weights
    # (pl.Buffered(1)) + f32 temporaries + margin, clamped below physical VMEM.
    io_bytes = 2 * rows * (H + O) * x.dtype.itemsize
    param_bytes = sum(int(p.size) * p.dtype.itemsize for p in params)
    tmp_bytes = rows * (H + 5 * F + 2 * O) * 4
    need = io_bytes + param_bytes + tmp_bytes + 2 * 1024 * 1024
    vmem_limit = int(min(max(need, 32 * 1024 * 1024), vmem_ceiling))

    def invariant_spec(a):
        # Grid-invariant operand: constant block index (never re-fetched) and
        # single-buffered (double-buffering a block that never changes wastes VMEM).
        return pl.BlockSpec(a.shape, lambda i: (0, 0), pipeline_mode=pl.Buffered(1))

    flops = 2 * B * T * (H * two_f + rows * F + F * O)
    transcendentals = B * T * (two_f + O)
    bytes_accessed = int((x.size + B * T * O) * x.dtype.itemsize + param_bytes)

    return pl.pallas_call(
        linear_layer_kernel,
        out_shape=jax.ShapeDtypeStruct((B, T, O), x.dtype),
        grid_spec=pltpu.PrefetchScalarGridSpec(
            num_scalar_prefetch=0,
            grid=(B // bt,),
            in_specs=[pl.BlockSpec((bt, T, H), lambda i: (i, 0, 0))]
                     + [invariant_spec(p) for p in params],
            out_specs=pl.BlockSpec((bt, T, O), lambda i: (i, 0, 0)),
        ),
        compiler_params=pltpu.CompilerParams(
            dimension_semantics=("parallel",),
            vmem_limit_bytes=vmem_limit),
        cost_estimate=pl.CostEstimate(flops=int(flops),
                                      transcendentals=int(transcendentals),
                                      bytes_accessed=int(bytes_accessed)),
    )(x, *params)


def reference(x, ln1_g, ln1_b, wu, bu, sgu_g, sgu_b, w_sp, b_sp,
              wv, bv, ln2_g, ln2_b, mxu_dtype=None):
    """Pure-JAX reference.  With mxu_dtype set, matmul operands are cast the same way
    the kernel feeds the MXU (tight apples-to-apples check); None keeps pure f32."""
    cast = (lambda a: a.astype(mxu_dtype)) if mxu_dtype is not None else (lambda a: a)

    def ln(t, g, b):
        m = jnp.mean(t, axis=-1, keepdims=True)
        var = jnp.mean((t - m) ** 2, axis=-1, keepdims=True)
        return (t - m) / jnp.sqrt(var + LN_EPS) * g + b

    F = wu.shape[0] // 2
    xn = ln(x, ln1_g, ln1_b)
    skip = xn
    h = _gelu(jnp.einsum('bth,fh->btf', cast(xn), cast(wu),
                         preferred_element_type=jnp.float32) + bu)
    u, v = h[..., :F], h[..., F:]
    v = ln(v, sgu_g, sgu_b)
    v = jnp.einsum('nm,bmf->bnf', cast(w_sp), cast(v),
                   preferred_element_type=jnp.float32) + b_sp[None, :, None]
    y = jnp.einsum('btf,of->bto', cast(u * v), cast(wv),
                   preferred_element_type=jnp.float32) + bv
    y = _gelu(ln(y, ln2_g, ln2_b))
    return 0.5 * (skip + y)


if __name__ == "__main__":
    # Small shapes; feature dims are multiples of 128 (lane-dense), seq % 8 == 0.
    batch, timesteps, hidden_dim = 2, 8, 128
    ffn_dim, out_dim = 128, 128                   # out_dim == hidden_dim (residual)

    key = jax.random.PRNGKey(0)
    kx, ku, kub, kv, kvb, ksp = jax.random.split(key, 6)

    x = jax.random.normal(kx, (batch, timesteps, hidden_dim), jnp.float32)

    # U_map / V_map: torch.nn.init.normal_(., 0, 0.01)
    wu = 0.01 * jax.random.normal(ku, (2 * ffn_dim, hidden_dim), jnp.float32)
    bu = 0.01 * jax.random.normal(kub, (2 * ffn_dim,), jnp.float32)
    wv = 0.01 * jax.random.normal(kv, (out_dim, ffn_dim), jnp.float32)
    bv = 0.01 * jax.random.normal(kvb, (out_dim,), jnp.float32)

    # LayerNorm affine defaults (weight=1, bias=0)
    ln1_g = jnp.ones((hidden_dim,), jnp.float32)
    ln1_b = jnp.zeros((hidden_dim,), jnp.float32)
    ln2_g = jnp.ones((out_dim,), jnp.float32)
    ln2_b = jnp.zeros((out_dim,), jnp.float32)
    sgu_g = jnp.ones((ffn_dim,), jnp.float32)
    sgu_b = jnp.zeros((ffn_dim,), jnp.float32)

    # Conv1d(T, T, k=1): uniform weight, bias = 1.0 (nn.init.constant_)
    bound = 1.0 / (timesteps ** 0.5)
    w_sp = jax.random.uniform(ksp, (timesteps, timesteps), jnp.float32, -bound, bound)
    b_sp = jnp.ones((timesteps,), jnp.float32)

    args = (x, ln1_g, ln1_b, wu, bu, sgu_g, sgu_b, w_sp, b_sp, wv, bv, ln2_g, ln2_b)

    out = linear_layer(*args)
    out = jax.block_until_ready(out)
    assert out.shape == (batch, timesteps, out_dim)

    # Tight check vs a reference whose matmuls consume the same bf16 operands.
    ref_matched = reference(*args, mxu_dtype=jnp.bfloat16)
    err_m = float(jnp.max(jnp.abs(out - ref_matched)))
    assert jnp.allclose(out, ref_matched, atol=2e-3, rtol=2e-3), \
        f"mismatch vs bf16-matched reference: {err_m}"

    # Loose sanity check vs the full-f32 reference (bf16 MXU feeds differ slightly,
    # amplified by the final LayerNorm at these tiny 0.01-scale weights).
    ref_f32 = reference(*args)
    err_f = float(jnp.max(jnp.abs(out - ref_f32)))
    assert jnp.allclose(out, ref_f32, atol=5e-2, rtol=5e-2), \
        f"mismatch vs f32 reference: {err_f}"

    print("KERNEL_OK")
</pallas_src>

<mosaic_0001>
module attributes {stable_mosaic.version = 11 : i64} {
  func.func @linear_layer_kernel(%arg0: i32, %arg1: memref<1x8x128xf32, #tpu.memory_space<vmem>>, %arg2: memref<1x128xf32, #tpu.memory_space<vmem>>, %arg3: memref<1x128xf32, #tpu.memory_space<vmem>>, %arg4: memref<128x256xbf16, #tpu.memory_space<vmem>>, %arg5: memref<1x256xf32, #tpu.memory_space<vmem>>, %arg6: memref<1x128xf32, #tpu.memory_space<vmem>>, %arg7: memref<1x128xf32, #tpu.memory_space<vmem>>, %arg8: memref<8x8xbf16, #tpu.memory_space<vmem>>, %arg9: memref<8x1xf32, #tpu.memory_space<vmem>>, %arg10: memref<128x128xbf16, #tpu.memory_space<vmem>>, %arg11: memref<1x128xf32, #tpu.memory_space<vmem>>, %arg12: memref<1x128xf32, #tpu.memory_space<vmem>>, %arg13: memref<1x128xf32, #tpu.memory_space<vmem>>, %arg14: memref<1x8x128xf32, #tpu.memory_space<vmem>>) attributes {dimension_semantics = [#tpu.dimension_semantics<parallel>], iteration_bounds = array<i64: 2>, scalar_prefetch = 0 : i64, scratch_operands = 0 : i64, tpu.core_type = #tpu.core_type<tc>, window_params = [{transform_indices = @transform_0, window_bounds = array<i64: 1, 8, 128>}, {pipeline_mode = #tpu.pipeline_mode<synchronous>, transform_indices = @transform_1, window_bounds = array<i64: 1, 128>}, {pipeline_mode = #tpu.pipeline_mode<synchronous>, transform_indices = @transform_2, window_bounds = array<i64: 1, 128>}, {pipeline_mode = #tpu.pipeline_mode<synchronous>, transform_indices = @transform_3, window_bounds = array<i64: 128, 256>}, {pipeline_mode = #tpu.pipeline_mode<synchronous>, transform_indices = @transform_4, window_bounds = array<i64: 1, 256>}, {pipeline_mode = #tpu.pipeline_mode<synchronous>, transform_indices = @transform_5, window_bounds = array<i64: 1, 128>}, {pipeline_mode = #tpu.pipeline_mode<synchronous>, transform_indices = @transform_6, window_bounds = array<i64: 1, 128>}, {pipeline_mode = #tpu.pipeline_mode<synchronous>, transform_indices = @transform_7, window_bounds = array<i64: 8, 8>}, {pipeline_mode = #tpu.pipeline_mode<synchronous>, transform_indices = @transform_8, window_bounds = array<i64: 8, 1>}, {pipeline_mode = #tpu.pipeline_mode<synchronous>, transform_indices = @transform_9, window_bounds = array<i64: 128, 128>}, {pipeline_mode = #tpu.pipeline_mode<synchronous>, transform_indices = @transform_10, window_bounds = array<i64: 1, 128>}, {pipeline_mode = #tpu.pipeline_mode<synchronous>, transform_indices = @transform_11, window_bounds = array<i64: 1, 128>}, {pipeline_mode = #tpu.pipeline_mode<synchronous>, transform_indices = @transform_12, window_bounds = array<i64: 1, 128>}, {transform_indices = @transform_13, window_bounds = array<i64: 1, 8, 128>}]} {
    %c0 = arith.constant 0 : index
    %c0_0 = arith.constant 0 : index
    %c0_1 = arith.constant 0 : index
    %0 = vector.load %arg1[%c0, %c0_0, %c0_1] : memref<1x8x128xf32, #tpu.memory_space<vmem>>, vector<1x8x128xf32>
    %1 = vector.shape_cast %0 : vector<1x8x128xf32> to vector<8x128xf32>
    %c0_2 = arith.constant 0 : index
    %c0_3 = arith.constant 0 : index
    %2 = vector.load %arg2[%c0_2, %c0_3] : memref<1x128xf32, #tpu.memory_space<vmem>>, vector<1x128xf32>
    %c0_4 = arith.constant 0 : index
    %c0_5 = arith.constant 0 : index
    %3 = vector.load %arg3[%c0_4, %c0_5] : memref<1x128xf32, #tpu.memory_space<vmem>>, vector<1x128xf32>
    %cst = arith.constant dense<0.000000e+00> : vector<8xf32>
    %4 = vector.multi_reduction <add>, %1, %cst [1] : vector<8x128xf32> to vector<8xf32>
    %5 = vector.shape_cast %4 : vector<8xf32> to vector<8x1xf32>
    %cst_6 = arith.constant 1.280000e+02 : f32
    %6 = vector.broadcast %cst_6 : f32 to vector<8x1xf32>
    %7 = arith.divf %5, %6 : vector<8x1xf32>
    %8 = vector.broadcast %7 : vector<8x1xf32> to vector<8x128xf32>
    %9 = arith.subf %1, %8 : vector<8x128xf32>
    %10 = arith.mulf %9, %9 : vector<8x128xf32>
    %cst_7 = arith.constant dense<0.000000e+00> : vector<8xf32>
    %11 = vector.multi_reduction <add>, %10, %cst_7 [1] : vector<8x128xf32> to vector<8xf32>
    %12 = vector.shape_cast %11 : vector<8xf32> to vector<8x1xf32>
    %cst_8 = arith.constant 1.280000e+02 : f32
    %13 = vector.broadcast %cst_8 : f32 to vector<8x1xf32>
    %14 = arith.divf %12, %13 : vector<8x1xf32>
    %cst_9 = arith.constant 9.99999974E-6 : f32
    %15 = vector.broadcast %cst_9 : f32 to vector<8x1xf32>
    %16 = arith.addf %14, %15 : vector<8x1xf32>
    %17 = math.rsqrt %16 : vector<8x1xf32>
    %18 = vector.broadcast %17 : vector<8x1xf32> to vector<8x128xf32>
    %19 = arith.mulf %9, %18 : vector<8x128xf32>
    %20 = vector.broadcast %2 : vector<1x128xf32> to vector<8x128xf32>
    %21 = arith.mulf %19, %20 : vector<8x128xf32>
    %22 = vector.broadcast %3 : vector<1x128xf32> to vector<8x128xf32>
    %23 = arith.addf %21, %22 : vector<8x128xf32>
    %24 = arith.truncf %23 : vector<8x128xf32> to vector<8x128xbf16>
    %c0_10 = arith.constant 0 : index
    %c0_11 = arith.constant 0 : index
    %25 = vector.load %arg4[%c0_10, %c0_11] : memref<128x256xbf16, #tpu.memory_space<vmem>>, vector<128x256xbf16>
    %cst_12 = arith.constant dense<0.000000e+00> : vector<8x256xf32>
    %26 = tpu.matmul %24, %25, %cst_12 {dimension_numbers = #tpu.dot_dimension_numbers<[1], [0], [0], [1], [0, 0, 1, 1], [], []>} : vector<8x128xbf16>, vector<128x256xbf16>, vector<8x256xf32> -> vector<8x256xf32>
    %c0_13 = arith.constant 0 : index
    %c0_14 = arith.constant 0 : index
    %27 = vector.load %arg5[%c0_13, %c0_14] : memref<1x256xf32, #tpu.memory_space<vmem>>, vector<1x256xf32>
    %28 = vector.broadcast %27 : vector<1x256xf32> to vector<8x256xf32>
    %29 = arith.addf %26, %28 : vector<8x256xf32>
    %cst_15 = arith.constant 5.000000e-01 : f32
    %30 = vector.broadcast %cst_15 : f32 to vector<8x256xf32>
    %31 = arith.mulf %30, %29 : vector<8x256xf32>
    %cst_16 = arith.constant 4.471500e-02 : f32
    %32 = vector.broadcast %cst_16 : f32 to vector<8x256xf32>
    %33 = arith.mulf %32, %29 : vector<8x256xf32>
    %34 = arith.mulf %33, %29 : vector<8x256xf32>
    %35 = arith.mulf %34, %29 : vector<8x256xf32>
    %36 = arith.addf %29, %35 : vector<8x256xf32>
    %cst_17 = arith.constant 0.797884583 : f32
    %37 = vector.broadcast %cst_17 : f32 to vector<8x256xf32>
    %38 = arith.mulf %37, %36 : vector<8x256xf32>
    %39 = math.tanh %38 : vector<8x256xf32>
    %cst_18 = arith.constant 1.000000e+00 : f32
    %40 = vector.broadcast %cst_18 : f32 to vector<8x256xf32>
    %41 = arith.addf %40, %39 : vector<8x256xf32>
    %42 = arith.mulf %31, %41 : vector<8x256xf32>
    %43 = vector.extract_strided_slice %42 {offsets = [0, 0], sizes = [8, 128], strides = [1, 1]} : vector<8x256xf32> to vector<8x128xf32>
    %44 = vector.extract_strided_slice %42 {offsets = [0, 128], sizes = [8, 128], strides = [1, 1]} : vector<8x256xf32> to vector<8x128xf32>
    %c0_19 = arith.constant 0 : index
    %c0_20 = arith.constant 0 : index
    %45 = vector.load %arg6[%c0_19, %c0_20] : memref<1x128xf32, #tpu.memory_space<vmem>>, vector<1x128xf32>
    %c0_21 = arith.constant 0 : index
    %c0_22 = arith.constant 0 : index
    %46 = vector.load %arg7[%c0_21, %c0_22] : memref<1x128xf32, #tpu.memory_space<vmem>>, vector<1x128xf32>
    %cst_23 = arith.constant dense<0.000000e+00> : vector<8xf32>
    %47 = vector.multi_reduction <add>, %44, %cst_23 [1] : vector<8x128xf32> to vector<8xf32>
    %48 = vector.shape_cast %47 : vector<8xf32> to vector<8x1xf32>
    %cst_24 = arith.constant 1.280000e+02 : f32
    %49 = vector.broadcast %cst_24 : f32 to vector<8x1xf32>
    %50 = arith.divf %48, %49 : vector<8x1xf32>
    %51 = vector.broadcast %50 : vector<8x1xf32> to vector<8x128xf32>
    %52 = arith.subf %44, %51 : vector<8x128xf32>
    %53 = arith.mulf %52, %52 : vector<8x128xf32>
    %cst_25 = arith.constant dense<0.000000e+00> : vector<8xf32>
    %54 = vector.multi_reduction <add>, %53, %cst_25 [1] : vector<8x128xf32> to vector<8xf32>
    %55 = vector.shape_cast %54 : vector<8xf32> to vector<8x1xf32>
    %cst_26 = arith.constant 1.280000e+02 : f32
    %56 = vector.broadcast %cst_26 : f32 to vector<8x1xf32>
    %57 = arith.divf %55, %56 : vector<8x1xf32>
    %cst_27 = arith.constant 9.99999974E-6 : f32
    %58 = vector.broadcast %cst_27 : f32 to vector<8x1xf32>
    %59 = arith.addf %57, %58 : vector<8x1xf32>
    %60 = math.rsqrt %59 : vector<8x1xf32>
    %61 = vector.broadcast %60 : vector<8x1xf32> to vector<8x128xf32>
    %62 = arith.mulf %52, %61 : vector<8x128xf32>
    %63 = vector.broadcast %45 : vector<1x128xf32> to vector<8x128xf32>
    %64 = arith.mulf %62, %63 : vector<8x128xf32>
    %65 = vector.broadcast %46 : vector<1x128xf32> to vector<8x128xf32>
    %66 = arith.addf %64, %65 : vector<8x128xf32>
    %c0_28 = arith.constant 0 : index
    %c0_29 = arith.constant 0 : index
    %67 = vector.load %arg8[%c0_28, %c0_29] : memref<8x8xbf16, #tpu.memory_space<vmem>>, vector<8x8xbf16>
    %68 = arith.truncf %66 : vector<8x128xf32> to vector<8x128xbf16>
    %cst_30 = arith.constant dense<0.000000e+00> : vector<8x128xf32>
    %69 = tpu.matmul %67, %68, %cst_30 {dimension_numbers = #tpu.dot_dimension_numbers<[1], [0], [0], [1], [0, 0, 1, 1], [], []>} : vector<8x8xbf16>, vector<8x128xbf16>, vector<8x128xf32> -> vector<8x128xf32>
    %c0_31 = arith.constant 0 : index
    %c0_32 = arith.constant 0 : index
    %70 = vector.load %arg9[%c0_31, %c0_32] : memref<8x1xf32, #tpu.memory_space<vmem>>, vector<8x1xf32>
    %71 = vector.broadcast %70 : vector<8x1xf32> to vector<8x128xf32>
    %72 = arith.addf %69, %71 : vector<8x128xf32>
    %73 = arith.mulf %43, %72 : vector<8x128xf32>
    %74 = arith.truncf %73 : vector<8x128xf32> to vector<8x128xbf16>
    %c0_33 = arith.constant 0 : index
    %c0_34 = arith.constant 0 : index
    %75 = vector.load %arg10[%c0_33, %c0_34] : memref<128x128xbf16, #tpu.memory_space<vmem>>, vector<128x128xbf16>
    %cst_35 = arith.constant dense<0.000000e+00> : vector<8x128xf32>
    %76 = tpu.matmul %74, %75, %cst_35 {dimension_numbers = #tpu.dot_dimension_numbers<[1], [0], [0], [1], [0, 0, 1, 1], [], []>} : vector<8x128xbf16>, vector<128x128xbf16>, vector<8x128xf32> -> vector<8x128xf32>
    %c0_36 = arith.constant 0 : index
    %c0_37 = arith.constant 0 : index
    %77 = vector.load %arg11[%c0_36, %c0_37] : memref<1x128xf32, #tpu.memory_space<vmem>>, vector<1x128xf32>
    %78 = vector.broadcast %77 : vector<1x128xf32> to vector<8x128xf32>
    %79 = arith.addf %76, %78 : vector<8x128xf32>
    %c0_38 = arith.constant 0 : index
    %c0_39 = arith.constant 0 : index
    %80 = vector.load %arg12[%c0_38, %c0_39] : memref<1x128xf32, #tpu.memory_space<vmem>>, vector<1x128xf32>
    %c0_40 = arith.constant 0 : index
    %c0_41 = arith.constant 0 : index
    %81 = vector.load %arg13[%c0_40, %c0_41] : memref<1x128xf32, #tpu.memory_space<vmem>>, vector<1x128xf32>
    %cst_42 = arith.constant dense<0.000000e+00> : vector<8xf32>
    %82 = vector.multi_reduction <add>, %79, %cst_42 [1] : vector<8x128xf32> to vector<8xf32>
    %83 = vector.shape_cast %82 : vector<8xf32> to vector<8x1xf32>
    %cst_43 = arith.constant 1.280000e+02 : f32
    %84 = vector.broadcast %cst_43 : f32 to vector<8x1xf32>
    %85 = arith.divf %83, %84 : vector<8x1xf32>
    %86 = vector.broadcast %85 : vector<8x1xf32> to vector<8x128xf32>
    %87 = arith.subf %79, %86 : vector<8x128xf32>
    %88 = arith.mulf %87, %87 : vector<8x128xf32>
    %cst_44 = arith.constant dense<0.000000e+00> : vector<8xf32>
    %89 = vector.multi_reduction <add>, %88, %cst_44 [1] : vector<8x128xf32> to vector<8xf32>
    %90 = vector.shape_cast %89 : vector<8xf32> to vector<8x1xf32>
    %cst_45 = arith.constant 1.280000e+02 : f32
    %91 = vector.broadcast %cst_45 : f32 to vector<8x1xf32>
    %92 = arith.divf %90, %91 : vector<8x1xf32>
    %cst_46 = arith.constant 9.99999974E-6 : f32
    %93 = vector.broadcast %cst_46 : f32 to vector<8x1xf32>
    %94 = arith.addf %92, %93 : vector<8x1xf32>
    %95 = math.rsqrt %94 : vector<8x1xf32>
    %96 = vector.broadcast %95 : vector<8x1xf32> to vector<8x128xf32>
    %97 = arith.mulf %87, %96 : vector<8x128xf32>
    %98 = vector.broadcast %80 : vector<1x128xf32> to vector<8x128xf32>
    %99 = arith.mulf %97, %98 : vector<8x128xf32>
    %100 = vector.broadcast %81 : vector<1x128xf32> to vector<8x128xf32>
    %101 = arith.addf %99, %100 : vector<8x128xf32>
    %cst_47 = arith.constant 5.000000e-01 : f32
    %102 = vector.broadcast %cst_47 : f32 to vector<8x128xf32>
    %103 = arith.mulf %102, %101 : vector<8x128xf32>
    %cst_48 = arith.constant 4.471500e-02 : f32
    %104 = vector.broadcast %cst_48 : f32 to vector<8x128xf32>
    %105 = arith.mulf %104, %101 : vector<8x128xf32>
    %106 = arith.mulf %105, %101 : vector<8x128xf32>
    %107 = arith.mulf %106, %101 : vector<8x128xf32>
    %108 = arith.addf %101, %107 : vector<8x128xf32>
    %cst_49 = arith.constant 0.797884583 : f32
    %109 = vector.broadcast %cst_49 : f32 to vector<8x128xf32>
    %110 = arith.mulf %109, %108 : vector<8x128xf32>
    %111 = math.tanh %110 : vector<8x128xf32>
    %cst_50 = arith.constant 1.000000e+00 : f32
    %112 = vector.broadcast %cst_50 : f32 to vector<8x128xf32>
    %113 = arith.addf %112, %111 : vector<8x128xf32>
    %114 = arith.mulf %103, %113 : vector<8x128xf32>
    %115 = arith.addf %23, %114 : vector<8x128xf32>
    %cst_51 = arith.constant 5.000000e-01 : f32
    %116 = vector.broadcast %cst_51 : f32 to vector<8x128xf32>
    %117 = arith.mulf %116, %115 : vector<8x128xf32>
    %118 = vector.shape_cast %117 : vector<8x128xf32> to vector<1x8x128xf32>
    %c0_52 = arith.constant 0 : index
    %c0_53 = arith.constant 0 : index
    %c0_54 = arith.constant 0 : index
    %119 = vector.load %arg14[%c0_52, %c0_53, %c0_54] : memref<1x8x128xf32, #tpu.memory_space<vmem>>, vector<1x8x128xf32>
    tpu.vector_store %arg14[%c0_52, %c0_53, %c0_54], %118 {strides = array<i32>} : memref<1x8x128xf32, #tpu.memory_space<vmem>>, vector<1x8x128xf32>,
    return
  }
  func.func @transform_0(%arg0: i32) -> (i32, i32, i32) {
    %c0_i32 = arith.constant 0 : i32
    %c0_i32_0 = arith.constant 0 : i32
    %c0_i32_1 = arith.constant 0 : i32
    return %arg0, %c0_i32, %c0_i32_0 : i32, i32, i32
  }
  func.func @transform_1(%arg0: i32) -> (i32, i32) {
    %c0_i32 = arith.constant 0 : i32
    %c0_i32_0 = arith.constant 0 : i32
    %c0_i32_1 = arith.constant 0 : i32
    return %c0_i32, %c0_i32_0 : i32, i32
  }
  func.func @transform_2(%arg0: i32) -> (i32, i32) {
    %c0_i32 = arith.constant 0 : i32
    %c0_i32_0 = arith.constant 0 : i32
    %c0_i32_1 = arith.constant 0 : i32
    return %c0_i32, %c0_i32_0 : i32, i32
  }
  func.func @transform_3(%arg0: i32) -> (i32, i32) {
    %c0_i32 = arith.constant 0 : i32
    %c0_i32_0 = arith.constant 0 : i32
    %c0_i32_1 = arith.constant 0 : i32
    return %c0_i32, %c0_i32_0 : i32, i32
  }
  func.func @transform_4(%arg0: i32) -> (i32, i32) {
    %c0_i32 = arith.constant 0 : i32
    %c0_i32_0 = arith.constant 0 : i32
    %c0_i32_1 = arith.constant 0 : i32
    return %c0_i32, %c0_i32_0 : i32, i32
  }
  func.func @transform_5(%arg0: i32) -> (i32, i32) {
    %c0_i32 = arith.constant 0 : i32
    %c0_i32_0 = arith.constant 0 : i32
    %c0_i32_1 = arith.constant 0 : i32
    return %c0_i32, %c0_i32_0 : i32, i32
  }
  func.func @transform_6(%arg0: i32) -> (i32, i32) {
    %c0_i32 = arith.constant 0 : i32
    %c0_i32_0 = arith.constant 0 : i32
    %c0_i32_1 = arith.constant 0 : i32
    return %c0_i32, %c0_i32_0 : i32, i32
  }
  func.func @transform_7(%arg0: i32) -> (i32, i32) {
    %c0_i32 = arith.constant 0 : i32
    %c0_i32_0 = arith.constant 0 : i32
    %c0_i32_1 = arith.constant 0 : i32
    return %c0_i32, %c0_i32_0 : i32, i32
  }
  func.func @transform_8(%arg0: i32) -> (i32, i32) {
    %c0_i32 = arith.constant 0 : i32
    %c0_i32_0 = arith.constant 0 : i32
    %c0_i32_1 = arith.constant 0 : i32
    return %c0_i32, %c0_i32_0 : i32, i32
  }
  func.func @transform_9(%arg0: i32) -> (i32, i32) {
    %c0_i32 = arith.constant 0 : i32
    %c0_i32_0 = arith.constant 0 : i32
    %c0_i32_1 = arith.constant 0 : i32
    return %c0_i32, %c0_i32_0 : i32, i32
  }
  func.func @transform_10(%arg0: i32) -> (i32, i32) {
    %c0_i32 = arith.constant 0 : i32
    %c0_i32_0 = arith.constant 0 : i32
    %c0_i32_1 = arith.constant 0 : i32
    return %c0_i32, %c0_i32_0 : i32, i32
  }
  func.func @transform_11(%arg0: i32) -> (i32, i32) {
    %c0_i32 = arith.constant 0 : i32
    %c0_i32_0 = arith.constant 0 : i32
    %c0_i32_1 = arith.constant 0 : i32
    return %c0_i32, %c0_i32_0 : i32, i32
  }
  func.func @transform_12(%arg0: i32) -> (i32, i32) {
    %c0_i32 = arith.constant 0 : i32
    %c0_i32_0 = arith.constant 0 : i32
    %c0_i32_1 = arith.constant 0 : i32
    return %c0_i32, %c0_i32_0 : i32, i32
  }
  func.func @transform_13(%arg0: i32) -> (i32, i32, i32) {
    %c0_i32 = arith.constant 0 : i32
    %c0_i32_0 = arith.constant 0 : i32
    %c0_i32_1 = arith.constant 0 : i32
    return %arg0, %c0_i32, %c0_i32_0 : i32, i32, i32
  }
}

</mosaic_0001>

<bundles_post_ra>
// kernel: tpu_custom_call.1
= control target key start
LH: loop header
LB: loop body
LE: loop exit
PB: predicated region body
PF: predicated region fallthrough
CT: control target
= control target key end

     0   :  { %s1745_s0 = inlined_call_operand.hbm [shape: f32[2,8,128], index: 0, kind: input, shape index: {}]   ;;  %s1746_s1 = inlined_call_operand.vmem [shape: f32[1,128], index: 1, kind: input, shape index: {}]   ;;  %s1747_s2 = inlined_call_operand.vmem [shape: f32[1,128], index: 2, kind: input, shape index: {}]   ;;  %s1748_s3 = inlined_call_operand.hbm [shape: bf16[128,256], index: 3, kind: input, shape index: {}]   ;;  %s1749_s4 = inlined_call_operand.vmem [shape: f32[1,256], index: 4, kind: input, shape index: {}]   ;;  %s1750_s5 = inlined_call_operand.vmem [shape: f32[1,128], index: 5, kind: input, shape index: {}]   ;;  %s1751_s6 = inlined_call_operand.vmem [shape: f32[1,128], index: 6, kind: input, shape index: {}]   ;;  %s1752_s7 = inlined_call_operand.vmem [shape: bf16[8,8], index: 7, kind: input, shape index: {}]   ;;  %s1753_s8 = inlined_call_operand.vmem [shape: f32[8,1], index: 8, kind: input, shape index: {}]   ;;  %s1754_s9 = inlined_call_operand.hbm [shape: bf16[128,128], index: 9, kind: input, shape index: {}]   ;;  %s1755_s10 = inlined_call_operand.vmem [shape: f32[1,128], index: 10, kind: input, shape index: {}]   ;;  %s1756_s11 = inlined_call_operand.vmem [shape: f32[1,128], index: 11, kind: input, shape index: {}]   ;;  %s1757_s12 = inlined_call_operand.vmem [shape: f32[1,128], index: 12, kind: input, shape index: {}]   ;;  %s1758_s13 = inlined_call_operand.hbm [shape: f32[2,8,128], index: 13, kind: output, shape index: {}]  }
   0x1   :  { %1765 = sst [smem:[#allocation14_spill]] %s1756_s11 }
   0x2   :  { %1766 = sst [smem:[#allocation15_spill]] %s1757_s12 }
   0x3   :  { %1767 = sst [smem:[#allocation16_spill]] %s1758_s13 }
   0x4   :  { %18 = vsyncpa [#allocation3], 0 }
   0x5   :  { %20 = vsyncpa [#allocation3 + $0x1], 0 }
   0x6   :  { %21 = vsyncpa [#allocation6], 0 }
   0x7   :  { %22 = vsyncpa [#allocation4], 0 }
   0x8   :  { %24 = vsyncpa [#allocation4 + $0x1], 0  ;;  %s1464_s25 = smov 0   ;;  %s1466_s26 = smov 0  }
   0x9   :  { %s1468_s27 = smov 0   ;;  %s1470_s28 = smov 0  }
   0xa LB: > { %1768 = sst [smem:[#allocation12_spill]] %s1369_s25  ;;  %s1485_s29 = sadd.s32 4294967295, %s1381_s28   ;;  %s1381_s28 = sphi %s1470_s28, %s1791_s28   ;;  %s1377_s27 = sphi %s1468_s27, %s1790_s27   ;;  %s1373_s26 = sphi %s1466_s26, %s1789_s26   ;;  %s1369_s25 = sphi %s1464_s25, %s1788_s25  }
   0xb   : > { %s1021_s30 = sadd.s32 4294967294, %s1381_s28   ;;  %p50_p0 = scmp.ne.s32.totalorder %s1373_s26, %s1369_s25 }
   0xc   : > { %p1761_p1 = scmp.eq.s32.totalorder %s1485_s29, 0  ;;  %p332_p3 = scmp.eq.s32.totalorder %s1021_s30, 1 }
   0xd   : > { %p1022_p5 = scmp.ge.s32.totalorder %s1381_s28, 1  ;;  %p339_p7 = scmp.lt.s32.totalorder %s1381_s28, 3 }
   0xe   : > { %p1494_p4 = por %p1761_p1, %p50_p0  ;;  %p1499_p6 = por %p332_p3, %p50_p0 }
   0xf   : > { %p1504_p8 = pnand %p1022_p5, %p339_p7  ;;  %s1383_s17 = smov [#allocation5]  }
  0x10   : > { %s1769_s14 = scalar_select %p1494_p4, 1, 0 }
  0x11   : > { %s1770_s15 = scalar_select %p1499_p6, 1, 0 }
  0x12   : > { %s357_s18 = sshll.u32 %s1383_s17, 4  ;;  %p1118_p9 = pneg %p1504_p8  ;;  %s1508_s18 = int_to_ptr.vmem [resolvable:$true] %s357_s18 }
  0x13   : > { %1771 = sst [smem:[#allocation13_spill]] %s1770_s15  ;;  %s1384_s20 = smov [#allocation7]  }
  0x14   : > { %p1515_p11 = pnand %p1118_p9, %p1761_p1  ;;  %s385_s21 = sshll.u32 %s1384_s20, 4  ;;  %s1519_s21 = int_to_ptr.vmem [resolvable:$true] %s385_s21 }
  0x15   : > { %s1225_s24 = scalar_lea.hbm %s1748_s3, 2048 }
  0x16   : > { %p1226_p12 = scmp.ne.s32.totalorder %s1748_s3, %s1225_s24  ;;  %p1227_p13 = pneg %p1515_p11 }
  0x17   : > { %p1232_p5 = scmp.lt.u32.totalorder %s1225_s24, %s1748_s3 }
  0x18   : > { %p1228_p0 = pnand %p1227_p13, %p1226_p12 }
  0x1a   : > { %p1229_p3 = pneg %p1228_p0 }
  0x1c   : > { %p1234_p7 = pnand %p1232_p5, %p1229_p3 }
  0x1e   : > { %1237 = shalt.err (!%p1234_p7)
}
  0x1f   : > { %s1238_s20 = scalar_lea.vmem %s1508_s18, 2048  ;;  %p1246_p2 = scmp.lt.s32.totalorder %s1508_s18, %s1508_s18 }
  0x20   : > { %p1239_p9 = scmp.ne.s32.totalorder %s1508_s18, %s1238_s20  ;;  %p1247_p12 = scmp.lt.s32.totalorder %s1238_s20, %s1238_s20 }
  0x22   : > { %p1241_p10 = pnand %p1239_p9, %p1227_p13  ;;  %p1248_p0 = por %p1247_p12, %p1246_p2 }
  0x24   : > { %p1242_p1 = pneg %p1241_p10 }
  0x26   : > { %p1249_p6 = pnand %p1248_p0, %p1242_p1 }
  0x28   : > { %1252 = shalt.err (!%p1249_p6)
}
  0x29   : > { %s1385_s25 = smov 128   ;;  %s1386_s15 = smov 8  }
  0x2a   : > { %1121 = dma.hbm_to_vmem [thread:$0]  (!%p1515_p11), %s1748_s3, 2048, %s1508_s18, [#allocation6], %s1385_s25, %s1385_s25, %s1386_s15  }
  0x2b   : > { %s1253_s17 = scalar_lea.hbm %s1754_s9, 1024 }
  0x2c   : > { %p1254_p2 = scmp.ne.s32.totalorder %s1754_s9, %s1253_s17  ;;  %p1260_p10 = scmp.lt.u32.totalorder %s1253_s17, %s1754_s9 }
  0x2e   : > { %p1256_p1 = pnand %p1254_p2, %p1227_p13 }
  0x30   : > { %p1257_p6 = pneg %p1256_p1 }
  0x32   : > { %p1262_p3 = pnand %p1260_p10, %p1257_p6 }
  0x34   : > { %1265 = shalt.err (!%p1262_p3)
}
  0x35   : > { %s1266_s18 = scalar_lea.vmem %s1519_s21, 1024  ;;  %p1274_p12 = scmp.lt.s32.totalorder %s1519_s21, %s1519_s21 }
  0x36   : > { %p1267_p5 = scmp.ne.s32.totalorder %s1519_s21, %s1266_s18  ;;  %p1275_p0 = scmp.lt.s32.totalorder %s1266_s18, %s1266_s18 }
  0x38   : > { %p1269_p7 = pnand %p1267_p5, %p1227_p13  ;;  %p1276_p2 = por %p1275_p0, %p1274_p12 }
  0x3a   : > { %p1270_p9 = pneg %p1269_p7 }
  0x3c   : > { %p1277_p1 = pnand %p1276_p2, %p1270_p9 }
  0x3e   : > { %1280 = shalt.err (!%p1277_p1)
}
  0x3f   : > { %s1387_s11 = smov 64   ;;  %s1388_s12 = smov 4  }
  0x40   : > { %1124 = dma.hbm_to_vmem [thread:$0]  (!%p1515_p11), %s1754_s9, 1024, %s1519_s21, [#allocation6], %s1387_s11, %s1387_s11, %s1388_s12  }
  0x41   : > { %s1574_s15 = sadd.s32 1, %s1381_s28   ;;  %s37_s23 = sadd.s32 1, %s1377_s27 }
  0x42   : > { %s34_s22 = ssub.s32 %s1381_s28, %s1574_s15  ;;  %p44_p6 = scmp.ne.s32.totalorder %s1377_s27, %s1373_s26 }
  0x43   : > { %p35_p13 = scmp.eq.s32.totalorder %s34_s22, 0  ;;  %p45_p10 = scmp.eq.s32.totalorder %s1381_s28, 0 }
  0x44   : > { %p1774_p5 = scmp.eq.s32.totalorder %s1485_s29, 1  ;;  %p1135_p9 = scmp.lt.s32.totalorder %s1381_s28, 2 }
  0x45   : > { %s1583_s24 = scalar_select %p35_p13, %s1377_s27, %s37_s23  }
  0x46   : > { %p46_p3 = por %p45_p10, %p44_p6  ;;  %p1587_p7 = por %p1774_p5, %p44_p6 }
  0x47   : > { %s408_s19 = sand.u32 1, %s1377_s27   ;;  %s1027_s21 = sshll.u32 %s1381_s28, 7 }
  0x48   : > { %s1775_s30 = scalar_select %p1587_p7, 1, 0 }
  0x49   : > { %s1026_s17 = sshll.u32 %s408_s19, 3  ;;  %s1597_s11 = scalar_lea.hbm %s1745_s0, %s1027_s21 }
  0x4a   : > { %s412_s12 = scalar_lea.vmem [#allocation2], %s1026_s17  ;;  %p1601_p11 = pnand %p1135_p9, %p46_p3 }
  0x4b   : > { %s419_s13 = sshll.u32 %s412_s12, 4  ;;  %s409_s22 = scalar_lea.sflag [#allocation3], %s408_s19  ;;  %s1599_s13 = int_to_ptr.vmem [resolvable:$true] %s419_s13 }
  0x4c   : > { %s1281_s23 = scalar_lea.hbm %s1597_s11, 128  ;;  %p1283_p0 = pneg %p1601_p11 }
  0x4d   : > { %p1282_p12 = scmp.ne.s32.totalorder %s1597_s11, %s1281_s23  ;;  %s1286_s20 = scalar_lea.hbm %s1745_s0, 256 }
  0x4e   : > { %p1287_p13 = scmp.lt.u32.totalorder %s1597_s11, %s1745_s0  ;;  %p1288_p6 = scmp.lt.u32.totalorder %s1286_s20, %s1281_s23 }
  0x4f   : > { %p1284_p2 = pnand %p1283_p0, %p1282_p12  ;;  %p1290_p3 = scmp.lt.u32.totalorder %s1281_s23, %s1597_s11 }
  0x50   : > { %p1289_p10 = por %p1288_p6, %p1287_p13 }
  0x51   : > { %p1285_p1 = pneg %p1284_p2 }
  0x52   : > { %p1291_p5 = por %p1290_p3, %p1289_p10 }
  0x54   : > { %p1292_p9 = pnand %p1291_p5, %p1285_p1 }
  0x56   : > { %1295 = shalt.err (!%p1292_p9)
}
  0x57   : > { %s1296_s19 = scalar_lea.vmem %s1599_s13, 128  ;;  %s1389_s21 = smov [#allocation2]  }
  0x58   : > { %p1297_p12 = scmp.ne.s32.totalorder %s1599_s13, %s1296_s19  ;;  %s1301_s17 = sshll.u32 %s1389_s21, 4  ;;  %s1302_s17 = int_to_ptr.vmem [resolvable:$false] %s1301_s17 }
  0x59   : > { %s1303_s18 = scalar_lea.vmem %s1302_s17, 256  ;;  %p1304_p4 = scmp.lt.s32.totalorder %s1599_s13, %s1302_s17 }
  0x5a   : > { %p1299_p2 = pnand %p1297_p12, %p1283_p0  ;;  %p1305_p13 = scmp.lt.s32.totalorder %s1303_s18, %s1296_s19 }
  0x5c   : > { %p1300_p7 = pneg %p1299_p2  ;;  %p1306_p6 = por %p1305_p13, %p1304_p4 }
  0x5e   : > { %p1307_p10 = pnand %p1306_p6, %p1300_p7 }
  0x60   : > { %1310 = shalt.err (!%p1307_p10)
}
  0x61   : > { %1128 = dma.hbm_to_vmem [thread:$0]  (!%p1601_p11), %s1597_s11, 128, %s1599_s13, %s409_s22  }
  0x62   : > { %428 = sbr.rel (%p1504_p8) target bundleno = 1766 (0x6e6), region = 72  ;;  %s1633_s23 = sand.u32 (!%p1504_p8), 1, %s1373_s26  }
  0x63   : > { %s1029_s20 = sshll.u32 (!%p1504_p8), %s1633_s23, 3  ;;  %s431_s12 = scalar_lea.sflag (!%p1504_p8), [#allocation3], %s1633_s23 }
  0x64   : > { %s434_s19 = scalar_lea.vmem (!%p1504_p8), [#allocation2], %s1029_s20  ;;  %p1777_p4 = scmp.ne.s32.totalorder (!%p1504_p8), %s1769_s14, 0 }
  0x69   : > { %1356 = dma.done.wait (%p1777_p4), %s431_s12, 128  }
  0x6a   : > { %1358 = vsyncadd (%p1777_p4), %s431_s12, 4294967168  ;;  %p1778_p7 = scmp.eq.s32.totalorder %s1485_s29, 0 }
  0x6c   : > { %1360 = dma.done.wait (%p1778_p7), [#allocation6], 3072   ;;  %p1779_p8 = pmov %p1778_p7 }
  0x6d   : > { %v486_v0 = vld [vmem:[%s434_s19] sm:$0xff]  ;;  %v1181_v1 = vld [vmem:[#allocation5 + $0x4] ss:$8 sps:$4 sm:$0xff]   ;;  %v1183_v2 = vld [vmem:[#allocation5] ss:$8 sps:$4 sm:$0xff]   ;;  %v1390_v16 = vmov 0   ;;  %v534_v32 = vlaneseq }
  0x6e   : > { %1362 = vsyncadd (%p1779_p8), [#allocation6], 4294964224  ;;  %489 = vadd.xlane.f32.xlu0 %v486_v0  ;;  %v1184_v3 = vld [vmem:[#allocation5 + $0x14] ss:$8 sps:$4 sm:$0xff]   ;;  %624 = vmatprep.subr.bf16.mxu0 %v1181_v1  ;;  %v1186_v4 = vld [vmem:[#allocation5 + $0x10] ss:$8 sps:$4 sm:$0xff]  }
  0x6f   : > { %625 = vmatpush1.bf16.msra.mxu0 %v1183_v2  ;;  %v1187_v5 = vld [vmem:[#allocation5 + $0x24] ss:$8 sps:$4 sm:$0xff]   ;;  %v1189_v10 = vld [vmem:[#allocation5 + $0x20] ss:$8 sps:$4 sm:$0xff]   ;;  %v1190_v11 = vld [vmem:[#allocation5 + $0x34] ss:$8 sps:$4 sm:$0xff]   ;;  %656 = vmatprep.mubr.bf16.mxu0 %v1390_v16 }
  0x70   : > { %626 = vmatprep.subr.bf16.mxu0 %v1184_v3  ;;  %v1192_v12 = vld [vmem:[#allocation5 + $0x30] ss:$8 sps:$4 sm:$0xff]   ;;  %v1193_v13 = vld [vmem:[#allocation5 + $0x44] ss:$8 sps:$4 sm:$0xff]   ;;  %v1195_v14 = vld [vmem:[#allocation5 + $0x40] ss:$8 sps:$4 sm:$0xff]   ;;  %1180 = vset.pattern.permute.xlu0 %v1390_v16 }
  0x71   : > { %v1196_v15 = vld [vmem:[#allocation5 + $0x54] ss:$8 sps:$4 sm:$0xff]   ;;  %v1198_v17 = vld [vmem:[#allocation5 + $0x50] ss:$8 sps:$4 sm:$0xff]   ;;  %v1199_v18 = vld [vmem:[#allocation5 + $0x64] ss:$8 sps:$4 sm:$0xff]  }
  0x72   : > { %v1201_v19 = vld [vmem:[#allocation5 + $0x60] ss:$8 sps:$4 sm:$0xff]   ;;  %v1202_v20 = vld [vmem:[#allocation5 + $0x74] ss:$8 sps:$4 sm:$0xff]   ;;  %v1204_v21 = vld [vmem:[#allocation5 + $0x70] ss:$8 sps:$4 sm:$0xff]  }
  0x73   : > { %627 = vmatpush1.bf16.msra.mxu0 %v1186_v4  ;;  %v1033_v26 = vld [vmem:[%s1746_s1] ss:$0 sm:$0xff]  ;;  %v1657_v33 = vshrl.u32 %v534_v32, 7  ;;  %v1391_v55 = vmov 0.0   ;;  %vm1392_vm0 = vmmov 0   ;;  %vm722_vm1 = vcmask 1043456  }
  0x74   : > { %628 = vmatprep.subr.bf16.mxu0 %v1187_v5  ;;  %v1034_v28 = vld [vmem:[%s1747_s2] ss:$0 sm:$0xff]  ;;  %1080 = vmatprep.subr.bf16.mxu1 %v1391_v55  ;;  %vm718_vm2 = vcmask 64512   ;;  %v1205_v5 = vld [vmem:[#allocation7] sm:$0xff]   ;;  %s1780_s17 = sld [smem:[#allocation14_spill]]  ;;  %s1781_s19 = sld [smem:[#allocation15_spill]] }
  0x75   : > { %v540_v34 = vsub.s32 1, %v1657_v33  ;;  %v1663_v35 = vld [vmem:[%s1749_s4] sm:$0x3]  ;;  %1082 = vmatprep.mubr.msk.bf16.mxu1 %vm1392_vm0, %v1391_v55  ;;  %s1066_s14 = sshll.u32 %s1485_s29, 7  ;;  %s484_s16 = scalar_lea.vmem [#allocation8], %s1029_s20 }
  0x76   : > { %v712_v56 = vld [vmem:[%s1753_s8] sm:$0xff]  ;;  %s932_s11 = sshll.u32 %s484_s16, 4  ;;  %s1782_s22 = sld [smem:[#allocation16_spill]]  ;;  %s1703_s11 = int_to_ptr.vmem [resolvable:$true] %s932_s11 }
  0x77   : > { %629 = vmatpush1.bf16.msra.mxu0 %v1189_v10  ;;  %v541_v36 = vrot.slane %v1663_v35, %v540_v34  ;;  %v1051_v61 = vld [vmem:[%s1750_s5] ss:$0 sm:$0xff]  ;;  %v1210_v10 = vld [vmem:[#allocation7 + $0x28] sm:$0xff]   ;;  %s1311_s18 = scalar_lea.vmem %s1703_s11, 128  ;;  %p1783_p0 = scmp.ne.s32.totalorder %s1775_s30, 0 }
  0x78   : > { %630 = vmatprep.subr.bf16.mxu0 %v1190_v11  ;;  %v1052_v63 = vld [vmem:[%s1751_s6] ss:$0 sm:$0xff]  ;;  %p1312_p11 = scmp.ne.s32.totalorder %s1703_s11, %s1311_s18  ;;  %s1393_s29 = smov [#allocation8]  }
  0x79   : > { %v710_v4 = vld [vmem:[%s1752_s7] sm:$0xf]  ;;  %s1315_s20 = sshll.u32 %s1393_s29, 4  ;;  %s1316_s20 = int_to_ptr.vmem [resolvable:$false] %s1315_s20 }
  0x7a   : > { %v1211_v11 = vld [vmem:[#allocation7 + $0x30] sm:$0xff]   ;;  %p1313_p1 = pnand %p1312_p11, %p1783_p0  ;;  %s1317_s12 = scalar_lea.vmem %s1316_s20, 256 }
  0x7b   : > { %631 = vmatpush1.bf16.msra.mxu0 %v1192_v12  ;;  %v1212_v12 = vld [vmem:[#allocation7 + $0x38] sm:$0xff]   ;;  %v1054_v34 = vld [vmem:[%s1755_s10] ss:$0 sm:$0xff]  ;;  %p1318_p5 = scmp.lt.s32.totalorder %s1703_s11, %s1316_s20  ;;  %p1319_p9 = scmp.lt.s32.totalorder %s1317_s12, %s1311_s18 }
  0x7c   : > { %632 = vmatprep.subr.bf16.mxu0 %v1193_v13  ;;  %v536_v13 = vsub.s32 0, %v1657_v33  ;;  %s1701_s21 = scalar_lea.hbm %s1782_s22, %s1066_s14  ;;  %p1314_p3 = pneg %p1313_p1 }
  0x7d   : > { %p1320_p12 = por %p1319_p9, %p1318_p5 }
  0x7f   : > { %633 = vmatpush1.bf16.msra.mxu0 %v1195_v14  ;;  %v537_v14 = vrot.slane %v1663_v35, %v536_v13  ;;  %p1321_p2 = pnand %p1320_p12, %p1314_p3 }
  0x80   : > { %634 = vmatprep.subr.bf16.mxu0 %v1196_v15 }
  0x83   : > { %635 = vmatpush1.bf16.msra.mxu0 %v1198_v17 }
  0x84   : > { %636 = vmatprep.subr.bf16.mxu0 %v1199_v18 }
  0x87   : > { %637 = vmatpush1.bf16.msra.mxu0 %v1201_v19 }
  0x88   : > { %638 = vmatprep.subr.bf16.mxu0 %v1202_v20 }
  0x8b   : > { %639 = vmatpush1.bf16.msra.mxu0 %v1204_v21 }
  0xfb   : > { %v490_v6 = vpop.xlane.xlu0 %489 }
  0xfc   : > { %v492_v7 = vmul.f32 0.0078125, %v490_v6  ;;  %v1206_v6 = vld [vmem:[#allocation7 + $0x8] sm:$0xff]  }
  0xfe   : > { %v493_v8 = vsub.f32 %v486_v0, %v492_v7  ;;  %v1207_v7 = vld [vmem:[#allocation7 + $0x10] sm:$0xff]  }
 0x100   : > { %v494_v9 = vmul.f32 %v493_v8, %v493_v8 }
 0x102   : > { %495 = vadd.xlane.f32.xlu0 %v494_v9  ;;  %v1209_v9 = vld [vmem:[#allocation7 + $0x20] sm:$0xff]  }
 0x118   : > { %715 = vperm.xlu0 %1180, %v712_v56  }
 0x18f   : > { %v496_v22 = vpop.xlane.xlu0 %495 }
 0x190   : > { %v497_v23 = vmul.f32 0.0078125, %v496_v22 }
 0x192   : > { %v498_v24 = vadd.f32 1e-05, %v497_v23 }
 0x194   : > { %1213 = vrsqrt.f32 %v498_v24 }
 0x197   : > { %v716_v23 = vpop.permute.xlu0 %715 }
 0x19e   : > { %v1214_v25 = vpop.eup %1213 }
 0x19f   : > { %v500_v27 = vmul.f32 %v1214_v25, %v493_v8  ;;  %v1208_v8 = vld [vmem:[#allocation7 + $0x18] sm:$0xff]  }
 0x1a1   : > { %v507_v29 = vmul.f32 %v1033_v26, %v500_v27 }
 0x1a3   : > { %v1653_v30 = vadd.f32 %v1034_v28, %v507_v29 }
 0x1a5   : > { %v515_v31 = vpack.c.bf16 %v1653_v30, %v1653_v30 }
 0x1a7   : > { %657 = vmatmul.mubr.bf16.vlgmr.msra.gmra.mrb[0].mxu0 %v515_v31 }
 0x27a   : > { %v1666_v37 = vpop.f32.mrb[0].mxu0 }
 0x27b   : > { %v660_v38 = vpop.f32.mrb[1].mxu0  ;;  %v659_v15 = vadd.f32 %v1666_v37, %v537_v14 }
 0x27c   : > { %v661_v39 = vadd.f32 %v660_v38, %v541_v36  ;;  %v662_v40 = vpop.f32.mrb[2].mxu0 }
 0x27d   : > { %v663_v41 = vpop.f32.mrb[3].mxu0  ;;  %v667_v16 = vmul.f32 0.044715, %v659_v15  ;;  %v665_v24 = vmul.f32 0.5, %v659_v15 }
 0x27e   : > { %v668_v42 = vmul.f32 0.044715, %v661_v39  ;;  %v666_v48 = vmul.f32 0.5, %v661_v39 }
 0x27f   : > { %v669_v17 = vmul.f32 %v667_v16, %v659_v15 }
 0x280   : > { %v670_v43 = vmul.f32 %v668_v42, %v661_v39 }
 0x281   : > { %v671_v18 = vmul.f32 %v669_v17, %v659_v15 }
 0x282   : > { %v672_v44 = vmul.f32 %v670_v43, %v661_v39 }
 0x283   : > { %v673_v19 = vadd.f32 %v671_v18, %v659_v15 }
 0x284   : > { %v674_v45 = vadd.f32 %v672_v44, %v661_v39 }
 0x285   : > { %v675_v20 = vmul.f32 0.7978846, %v673_v19 }
 0x286   : > { %v676_v46 = vmul.f32 0.7978846, %v674_v45 }
 0x288   : > { %1215 = vtanh.f32 %v676_v46 }
 0x292   : > { %v1216_v47 = vpop.eup %1215 }
 0x293   : > { %v680_v49 = vadd.f32 1.0, %v1216_v47 }
 0x295   : > { %v682_v50 = vmul.f32 %v680_v49, %v666_v48  ;;  %v1063_v48 = vld [vmem:[%s1780_s17] ss:$0 sm:$0xff]  ;;  %s919_s17 = scalar_lea.sflag [#allocation4], %s1633_s23 }
 0x297   : > { %685 = vadd.xlane.f32.xlu1 %v682_v50 }
 0x324   : > { %v686_v51 = vpop.xlane.xlu1 %685 }
 0x325   : > { %v687_v52 = vmul.f32 0.0078125, %v686_v51 }
 0x327   : > { %v688_v53 = vsub.f32 %v682_v50, %v687_v52  ;;  %v1064_v50 = vld [vmem:[%s1781_s19] ss:$0 sm:$0xff] }
 0x329   : > { %v689_v54 = vmul.f32 %v688_v53, %v688_v53 }
 0x32b   : > { %690 = vadd.xlane.f32.xlu1 %v689_v54 }
 0x3b8   : > { %v691_v57 = vpop.xlane.xlu1 %690 }
 0x3b9   : > { %v692_v58 = vmul.f32 0.0078125, %v691_v57 }
 0x3bb   : > { %v693_v59 = vadd.f32 1e-05, %v692_v58 }
 0x3bd   : > { %1217 = vrsqrt.f32 %v693_v59 }
 0x3be   : > { %1219 = vtanh.f32 %v675_v20 }
 0x3c7   : > { %v1218_v60 = vpop.eup %1217 }
 0x3c8   : > { %v695_v62 = vmul.f32 %v1218_v60, %v688_v53  ;;  %v1220_v21 = vpop.eup %1219 }
 0x3c9   : > { %v679_v22 = vadd.f32 1.0, %v1220_v21 }
 0x3ca   : > { %v702_v0 = vmul.f32 %v1051_v61, %v695_v62 }
 0x3cb   : > { %v681_v26 = vmul.f32 %v679_v22, %v665_v24 }
 0x3cc   : > { %v709_v1 = vadd.f32 %v1052_v63, %v702_v0 }
 0x3ce   : > { %v711_v2 = vpack.c.bf16 %v709_v1, %v709_v1 }
 0x3d0   : > { %v724_v3 = vsel %vm722_vm1, %v711_v2, 0 }
 0x3d1   : > { %1081 = vmatpush3.bf16.msra.mxu1 %v724_v3 }
 0x3d2   : > { %1086 = vmatprep.subr.bf16.mxu1 %v1391_v55 }
 0x3d4   : > { %1083 = vmatmul.mubr.msk.bf16.vlgmr.msra.gmra.mrb[0].mxu1 %vm718_vm2, %v710_v4 }
 0x3d5   : > { %1087 = vmatpush3.bf16.msra.mxu1 %v1205_v5  ;;  %1102 = vmatprep.mubr.msk.bf16.mxu1 %vm1392_vm0, %v1391_v55 }
 0x3d6   : > { %1088 = vmatprep.subr.bf16.mxu1 %v1391_v55 }
 0x3d9   : > { %1089 = vmatpush3.bf16.msra.mxu1 %v1206_v6 }
 0x3da   : > { %1090 = vmatprep.subr.bf16.mxu1 %v1391_v55 }
 0x3dd   : > { %1091 = vmatpush3.bf16.msra.mxu1 %v1207_v7 }
 0x3de   : > { %1092 = vmatprep.subr.bf16.mxu1 %v1391_v55 }
 0x3e1   : > { %1093 = vmatpush3.bf16.msra.mxu1 %v1208_v8 }
 0x3e2   : > { %1094 = vmatprep.subr.bf16.mxu1 %v1391_v55 }
 0x3e5   : > { %1095 = vmatpush3.bf16.msra.mxu1 %v1209_v9 }
 0x3e6   : > { %1096 = vmatprep.subr.bf16.mxu1 %v1391_v55 }
 0x3e9   : > { %1097 = vmatpush3.bf16.msra.mxu1 %v1210_v10 }
 0x3ea   : > { %1098 = vmatprep.subr.bf16.mxu1 %v1391_v55 }
 0x3ed   : > { %1099 = vmatpush3.bf16.msra.mxu1 %v1211_v11 }
 0x3ee   : > { %1100 = vmatprep.subr.bf16.mxu1 %v1391_v55 }
 0x3f1   : > { %1101 = vmatpush3.bf16.msra.mxu1 %v1212_v12 }
 0x4a7   : > { %v760_v25 = vpop.f32.mrb[0].mxu1 }
 0x4a8   : > { %v761_v27 = vadd.f32 %v760_v25, %v716_v23  ;;  %v1084_v28 = vpop.f32.mrb[1].mxu1 }
 0x4a9   : > { %v763_v29 = vpop.f32.mrb[2].mxu1 }
 0x4aa   : > { %v766_v31 = vmul.f32 %v761_v27, %v681_v26  ;;  %v1085_v32 = vpop.f32.mrb[3].mxu1 }
 0x4ac   : > { %v767_v33 = vpack.c.bf16 %v766_v31, %v766_v31 }
 0x4ae   : > { %1103 = vmatmul.mubr.bf16.vlgmr.msra.gmra.mrb[4].mxu1 %v767_v33 }
 0x581   : > { %v873_v35 = vpop.f32.mrb[4].mxu1 }
 0x582   : > { %v874_v36 = vadd.f32 %v1054_v34, %v873_v35  ;;  %v1104_v37 = vpop.f32.mrb[5].mxu1 }
 0x583   : > { %v876_v38 = vpop.f32.mrb[6].mxu1 }
 0x584   : > { %881 = vadd.xlane.f32.xlu1 %v874_v36  ;;  %v1105_v39 = vpop.f32.mrb[7].mxu1 }
 0x611   : > { %v882_v40 = vpop.xlane.xlu1 %881 }
 0x612   : > { %v883_v41 = vmul.f32 0.0078125, %v882_v40 }
 0x614   : > { %v884_v42 = vsub.f32 %v874_v36, %v883_v41 }
 0x616   : > { %v885_v43 = vmul.f32 %v884_v42, %v884_v42 }
 0x618   : > { %886 = vadd.xlane.f32.xlu1 %v885_v43 }
 0x6a5   : > { %v887_v44 = vpop.xlane.xlu1 %886 }
 0x6a6   : > { %v888_v45 = vmul.f32 0.0078125, %v887_v44 }
 0x6a8   : > { %v889_v46 = vadd.f32 1e-05, %v888_v45 }
 0x6aa   : > { %1221 = vrsqrt.f32 %v889_v46 }
 0x6b4   : > { %v1222_v47 = vpop.eup %1221 }
 0x6b5   : > { %v891_v49 = vmul.f32 %v1222_v47, %v884_v42 }
 0x6b7   : > { %v898_v51 = vmul.f32 %v1063_v48, %v891_v49 }
 0x6b9   : > { %v905_v52 = vadd.f32 %v1064_v50, %v898_v51 }
 0x6bb   : > { %v907_v53 = vmul.f32 0.044715, %v905_v52  ;;  %v906_v59 = vmul.f32 0.5, %v905_v52 }
 0x6bd   : > { %v908_v54 = vmul.f32 %v907_v53, %v905_v52 }
 0x6bf   : > { %v909_v55 = vmul.f32 %v908_v54, %v905_v52 }
 0x6c1   : > { %v910_v56 = vadd.f32 %v909_v55, %v905_v52 }
 0x6c3   : > { %v911_v57 = vmul.f32 0.7978846, %v910_v56 }
 0x6c5   : > { %1223 = vtanh.f32 %v911_v57 }
 0x6cf   : > { %v1224_v58 = vpop.eup %1223 }
 0x6d0   : > { %v913_v60 = vadd.f32 1.0, %v1224_v58 }
 0x6d2   : > { %v914_v61 = vmul.f32 %v913_v60, %v906_v59 }
 0x6d4   : > { %v915_v62 = vadd.f32 %v914_v61, %v1653_v30 }
 0x6d6   : > { %v916_v63 = vmul.f32 0.5, %v915_v62 }
 0x6d8   : > { %917 = vst [vmem:[%s484_s16] sm:$0xff] %v916_v63 }
 0x6d9   : > { %1324 = shalt.err (!%p1321_p2)
}
 0x6da   : > { %s1325_s23 = scalar_lea.hbm %s1701_s21, 128  ;;  %s1329_s16 = scalar_lea.hbm %s1782_s22, 256 }
 0x6db   : > { %p1326_p13 = scmp.ne.s32.totalorder %s1701_s21, %s1325_s23  ;;  %p1330_p4 = scmp.lt.u32.totalorder %s1701_s21, %s1782_s22 }
 0x6dc   : > { %p1331_p7 = scmp.lt.u32.totalorder %s1329_s16, %s1325_s23  ;;  %p1333_p11 = scmp.lt.u32.totalorder %s1325_s23, %s1701_s21 }
 0x6dd   : > { %p1327_p6 = pnand %p1326_p13, %p1783_p0 }
 0x6de   : > { %p1332_p8 = por %p1331_p7, %p1330_p4 }
 0x6df   : > { %p1328_p10 = pneg %p1327_p6 }
 0x6e0   : > { %p1334_p1 = por %p1333_p11, %p1332_p8 }
 0x6e2   : > { %p1335_p3 = pnand %p1334_p1, %p1328_p10 }
 0x6e4   : > { %1338 = shalt.err (!%p1335_p3)
}
 0x6e5   : > { %1116 = dma.vmem_to_hbm [thread:$0]  (%p1783_p0), %s1703_s11, 128, %s1701_s21, %s919_s17  }
 0x6e6 PF: > { %s1784_s18 = sld [smem:[#allocation12_spill]]  ;;  %s1785_s29 = sld [smem:[#allocation13_spill]] }
 0x6e7   : > { %p1787_p9 = scmp.ge.s32.totalorder %s1381_s28, 2 }
 0x6ec   : > { %s944_s20 = sand.u32 1, %s1784_s18   ;;  %p1786_p5 = scmp.ne.s32.totalorder %s1785_s29, 0 }
 0x6ed   : > { %s945_s12 = scalar_lea.sflag [#allocation4], %s944_s20 }
 0x6ee   : > { %p1130_p12 = pnand %p1787_p9, %p1786_p5 }
 0x6f0   : > { %1364 = dma.done.wait (!%p1130_p12), %s945_s12, 128  }
 0x6f1   : > { %1366 = vsyncadd (!%p1130_p12), %s945_s12, 4294967168  ;;  %p27_p2 = scmp.ge.s32.totalorder %s1574_s15, 4   ;;  %s1788_s25 = smov %s1373_s26 }
 0x6f2   : > { %s1789_s26 = smov %s1377_s27  ;;  %s1790_s27 = smov %s1583_s24 }
 0x6f3   : > { %s1791_s28 = smov %s1574_s15  ;;  %29 = sbr.rel (!%p27_p2) target bundleno = 10 (0xa), region = 125 }
 0x6fa   :  { %950 = vsyncpa [#allocation3], 1 }
 0x6fb   :  { %952 = vsyncpa [#allocation3 + $0x1], 1 }
 0x6fc   :  { %953 = vsyncpa [#allocation6], 1 }
 0x6fd   :  { %954 = vsyncpa [#allocation4], 1 }
 0x6fe   :  { %956 = vsyncpa [#allocation4 + $0x1], 1 }

</bundles_post_ra>
